<compile_context>
chip_gen: v7x
topology: tpu7x:2x2x1
jax: 0.10.0
libtpu: 0.0.40
codegen_flags: <defaults>
</compile_context>

<pallas_src>
import functools

import jax
import jax.numpy as jnp
from jax.experimental import pallas as pl
from jax.experimental.pallas import tpu as pltpu


# ----------------------------- Pallas kernel ------------------------------- #
def _discriminator_kernel(xt_ref, xn_ref,
                          w1t_ref, b1t_ref, w2t_ref, b2t_ref, w3t_ref,
                          w1n_ref, b1n_ref, w2n_ref, b2n_ref, w3n_ref,
                          b3_ref, out_ref):
    # Activations may arrive as bf16 (HBM-traffic halving); compute in f32.
    xt = xt_ref[...].astype(jnp.float32)
    xn = xn_ref[...].astype(jnp.float32)

    # --- type branch ---
    h1t = jnp.tanh(
        jnp.dot(xt, w1t_ref[...], preferred_element_type=jnp.float32)
        + b1t_ref[...])
    h2t = jnp.tanh(
        jnp.dot(h1t, w2t_ref[...], preferred_element_type=jnp.float32)
        + b2t_ref[...])
    ot = jnp.dot(h2t, w3t_ref[...], preferred_element_type=jnp.float32)

    # --- node branch ---
    h1n = jnp.tanh(
        jnp.dot(xn, w1n_ref[...], preferred_element_type=jnp.float32)
        + b1n_ref[...])
    h2n = jnp.tanh(
        jnp.dot(h1n, w2n_ref[...], preferred_element_type=jnp.float32)
        + b2n_ref[...])
    on = jnp.dot(h2n, w3n_ref[...], preferred_element_type=jnp.float32)

    # Scalar bias (b3_type + b3_node) from SMEM.
    out_ref[...] = (ot + on + b3_ref[0]).astype(out_ref.dtype)


# --------------------- one-time parameter preprocessing --------------------- #
def prepare_params(params, hidden_units, w_down_discriminator_size):
    """Fold PyTorch-layout (out,in) weights into kernel-layout operands.

    Done ONCE at setup, not per forward call.  Weights are tiny and stay
    VMEM-resident, so they are kept f32.
    """
    assert w_down_discriminator_size == hidden_units, (
        "lstm_type only type-checks when W_down_discriminator_size == hidden_units")

    def wT(name):
        return jnp.asarray(params[name], jnp.float32).T          # (in, out)

    def brow(name):
        return jnp.asarray(params[name], jnp.float32).reshape(1, -1)

    return {
        "w1t": wT("lin_in_type.w"),   "b1t": brow("lin_in_type.b"),
        "w2t": wT("lstm_type.w"),     "b2t": brow("lstm_type.b"),
        "w3t": wT("lin_out_3_type.w"),
        "w1n": wT("lin_in_node.w"),   "b1n": brow("lin_in_node.b"),
        "w2n": wT("lstm_node.w"),     "b2n": brow("lstm_node.b"),
        "w3n": wT("lin_out_3_node.w"),
        "b3": (jnp.asarray(params["lin_out_3_type.b"], jnp.float32)
               + jnp.asarray(params["lin_out_3_node.b"], jnp.float32)).reshape(1),
    }


# ------------------------------ JAX wrapper -------------------------------- #
@functools.partial(jax.jit, static_argnames=("batch_tile",))
def discriminator_forward(input_type, input_node,
                          w1t, b1t, w2t, b2t, w3t,
                          w1n, b1n, w2n, b2n, w3n, b3,
                          batch_tile=512):
    """Forward pass. input_type: (B,L,C); input_node: (B,L,N+1). f32 or bf16."""
    B = input_type.shape[0]
    # Pure reshape views — no HBM copy, no dtype cast in the wrapper.
    xt = input_type.reshape(B, -1)                 # (B, d_type)
    xn = input_node.reshape(B, -1)                 # (B, d_node)
    d_type = xt.shape[1]
    d_node = xn.shape[1]
    H = w1t.shape[1]

    # Single gridded path for every B; partial tail block is masked by Pallas.
    tile = B if B <= batch_tile else batch_tile
    grid = (pl.cdiv(B, tile),)

    smem = pltpu.MemorySpace.SMEM

    grid_spec = pltpu.PrefetchScalarGridSpec(
        num_scalar_prefetch=0,
        grid=grid,
        in_specs=[
            pl.BlockSpec((tile, d_type), lambda i: (i, 0)),   # xt tile
            pl.BlockSpec((tile, d_node), lambda i: (i, 0)),   # xn tile
            pl.BlockSpec((d_type, H), lambda i: (0, 0)),      # w1t (VMEM-resident)
            pl.BlockSpec((1, H), lambda i: (0, 0)),           # b1t
            pl.BlockSpec((H, H), lambda i: (0, 0)),           # w2t
            pl.BlockSpec((1, H), lambda i: (0, 0)),           # b2t
            pl.BlockSpec((H, 1), lambda i: (0, 0)),           # w3t
            pl.BlockSpec((d_node, H), lambda i: (0, 0)),      # w1n
            pl.BlockSpec((1, H), lambda i: (0, 0)),           # b1n
            pl.BlockSpec((H, H), lambda i: (0, 0)),           # w2n
            pl.BlockSpec((1, H), lambda i: (0, 0)),           # b2n
            pl.BlockSpec((H, 1), lambda i: (0, 0)),           # w3n
            pl.BlockSpec(memory_space=smem),                  # b3 scalar (SMEM)
        ],
        out_specs=pl.BlockSpec((tile, 1), lambda i: (i, 0)),
    )

    return pl.pallas_call(
        _discriminator_kernel,
        out_shape=jax.ShapeDtypeStruct((B, 1), jnp.float32),
        grid_spec=grid_spec,
        compiler_params=pltpu.CompilerParams(
            dimension_semantics=("parallel",)),
    )(xt, xn, w1t, b1t, w2t, b2t, w3t, w1n, b1n, w2n, b2n, w3n, b3)


# --------------------------- deterministic params -------------------------- #
def make_params(key, N, max_path_len, node_classes, hidden_units):
    d_type = max_path_len * node_classes
    d_node = max_path_len * (N + 1)
    shapes = {
        "lin_in_type.w": (hidden_units, d_type),
        "lin_in_type.b": (hidden_units,),
        "lstm_type.w": (hidden_units, hidden_units),  # W_down_discriminator_size == hidden_units
        "lstm_type.b": (hidden_units,),
        "lin_out_3_type.w": (1, hidden_units),
        "lin_out_3_type.b": (1,),
        "lin_in_node.w": (hidden_units, d_node),
        "lin_in_node.b": (hidden_units,),
        "lstm_node.w": (hidden_units, hidden_units),
        "lstm_node.b": (hidden_units,),
        "lin_out_3_node.w": (1, hidden_units),
        "lin_out_3_node.b": (1,),
    }
    params = {}
    for i, (name, shp) in enumerate(sorted(shapes.items())):
        k = jax.random.fold_in(key, i)
        fan_in = shp[-1] if len(shp) > 1 else 1
        params[name] = (jax.random.normal(k, shp, jnp.float32)
                        / jnp.sqrt(fan_in + 1.0))
    return params


# ------------------------------ pure-JAX ref -------------------------------- #
def discriminator_ref(input_type, input_node, params):
    B = input_type.shape[0]
    xt = input_type.reshape(B, -1).astype(jnp.float32)
    xn = input_node.reshape(B, -1).astype(jnp.float32)
    ht = jnp.tanh(xt @ params["lin_in_type.w"].T + params["lin_in_type.b"])
    ht = jnp.tanh(ht @ params["lstm_type.w"].T + params["lstm_type.b"])
    ot = ht @ params["lin_out_3_type.w"].T + params["lin_out_3_type.b"]
    hn = jnp.tanh(xn @ params["lin_in_node.w"].T + params["lin_in_node.b"])
    hn = jnp.tanh(hn @ params["lstm_node.w"].T + params["lstm_node.b"])
    on = hn @ params["lin_out_3_node.w"].T + params["lin_out_3_node.b"]
    return ot + on


if __name__ == "__main__":
    # Small synthetic configuration (dataset 'syn_100' -> node_classes = 4)
    B = 4              # batch_size
    N = 16             # number of nodes
    MAX_PATH_LEN = 8
    NODE_CLASSES = 4
    HIDDEN = 32        # hidden_units == W_down_discriminator_size

    key = jax.random.PRNGKey(0)
    k_params, k_t, k_n = jax.random.split(key, 3)

    params = make_params(k_params, N, MAX_PATH_LEN, NODE_CLASSES, HIDDEN)
    prep = prepare_params(params, HIDDEN, HIDDEN)   # one-time setup

    # ---- small batch (single tile, f32 activations) ----
    input_type = jax.random.normal(k_t, (B, MAX_PATH_LEN, NODE_CLASSES), jnp.float32)
    input_node = jax.random.normal(k_n, (B, MAX_PATH_LEN, N + 1), jnp.float32)

    out = discriminator_forward(input_type, input_node, **prep)
    out = jax.block_until_ready(out)
    ref = discriminator_ref(input_type, input_node, params)
    assert out.shape == (B, 1), out.shape
    assert jnp.allclose(out, ref, atol=1e-5, rtol=1e-5), (out, ref)

    # ---- larger batch: cdiv grid with a masked partial tail tile,
    #      bf16 activations in HBM (half the dominant HBM read) ----
    BL = 700                      # not a multiple of batch_tile -> partial tail
    kt2, kn2 = jax.random.split(jax.random.fold_in(key, 99))
    input_type_l = jax.random.normal(
        kt2, (BL, MAX_PATH_LEN, NODE_CLASSES), jnp.float32).astype(jnp.bfloat16)
    input_node_l = jax.random.normal(
        kn2, (BL, MAX_PATH_LEN, N + 1), jnp.float32).astype(jnp.bfloat16)

    out_l = discriminator_forward(input_type_l, input_node_l, **prep,
                                  batch_tile=256)
    out_l = jax.block_until_ready(out_l)
    ref_l = discriminator_ref(input_type_l, input_node_l, params)
    assert out_l.shape == (BL, 1), out_l.shape
    assert jnp.allclose(out_l, ref_l, atol=1e-3, rtol=1e-3)

    print("KERNEL_OK")
</pallas_src>

<mosaic_0001>
module attributes {stable_mosaic.version = 11 : i64} {
  func.func @_discriminator_kernel(%arg0: i32, %arg1: memref<4x32xf32, #tpu.memory_space<vmem>>, %arg2: memref<4x136xf32, #tpu.memory_space<vmem>>, %arg3: memref<32x32xf32, #tpu.memory_space<vmem>>, %arg4: memref<1x32xf32, #tpu.memory_space<vmem>>, %arg5: memref<32x32xf32, #tpu.memory_space<vmem>>, %arg6: memref<1x32xf32, #tpu.memory_space<vmem>>, %arg7: memref<32x1xf32, #tpu.memory_space<vmem>>, %arg8: memref<136x32xf32, #tpu.memory_space<vmem>>, %arg9: memref<1x32xf32, #tpu.memory_space<vmem>>, %arg10: memref<32x32xf32, #tpu.memory_space<vmem>>, %arg11: memref<1x32xf32, #tpu.memory_space<vmem>>, %arg12: memref<32x1xf32, #tpu.memory_space<vmem>>, %arg13: memref<1xf32, #tpu.memory_space<smem>>, %arg14: memref<4x1xf32, #tpu.memory_space<vmem>>) attributes {dimension_semantics = [#tpu.dimension_semantics<parallel>], iteration_bounds = array<i64: 1>, scalar_prefetch = 0 : i64, scratch_operands = 0 : i64, tpu.core_type = #tpu.core_type<tc>, window_params = [{transform_indices = @transform_0, window_bounds = array<i64: 4, 32>}, {transform_indices = @transform_1, window_bounds = array<i64: 4, 136>}, {pipeline_mode = #tpu.pipeline_mode<synchronous>, transform_indices = @transform_2, window_bounds = array<i64: 32, 32>}, {pipeline_mode = #tpu.pipeline_mode<synchronous>, transform_indices = @transform_3, window_bounds = array<i64: 1, 32>}, {pipeline_mode = #tpu.pipeline_mode<synchronous>, transform_indices = @transform_4, window_bounds = array<i64: 32, 32>}, {pipeline_mode = #tpu.pipeline_mode<synchronous>, transform_indices = @transform_5, window_bounds = array<i64: 1, 32>}, {pipeline_mode = #tpu.pipeline_mode<synchronous>, transform_indices = @transform_6, window_bounds = array<i64: 32, 1>}, {pipeline_mode = #tpu.pipeline_mode<synchronous>, transform_indices = @transform_7, window_bounds = array<i64: 136, 32>}, {pipeline_mode = #tpu.pipeline_mode<synchronous>, transform_indices = @transform_8, window_bounds = array<i64: 1, 32>}, {pipeline_mode = #tpu.pipeline_mode<synchronous>, transform_indices = @transform_9, window_bounds = array<i64: 32, 32>}, {pipeline_mode = #tpu.pipeline_mode<synchronous>, transform_indices = @transform_10, window_bounds = array<i64: 1, 32>}, {pipeline_mode = #tpu.pipeline_mode<synchronous>, transform_indices = @transform_11, window_bounds = array<i64: 32, 1>}, {transform_indices = @transform_12, window_bounds = array<i64: 1>}, {transform_indices = @transform_13, window_bounds = array<i64: 4, 1>}]} {
    %c0 = arith.constant 0 : index
    %c0_0 = arith.constant 0 : index
    %0 = vector.load %arg1[%c0, %c0_0] : memref<4x32xf32, #tpu.memory_space<vmem>>, vector<4x32xf32>
    %c0_1 = arith.constant 0 : index
    %c0_2 = arith.constant 0 : index
    %1 = vector.load %arg2[%c0_1, %c0_2] : memref<4x136xf32, #tpu.memory_space<vmem>>, vector<4x136xf32>
    %c0_3 = arith.constant 0 : index
    %c0_4 = arith.constant 0 : index
    %2 = vector.load %arg3[%c0_3, %c0_4] : memref<32x32xf32, #tpu.memory_space<vmem>>, vector<32x32xf32>
    %cst = arith.constant dense<0.000000e+00> : vector<4x32xf32>
    %3 = tpu.matmul %0, %2, %cst {dimension_numbers = #tpu.dot_dimension_numbers<[1], [0], [0], [1], [0, 0, 1, 1], [], []>} : vector<4x32xf32>, vector<32x32xf32>, vector<4x32xf32> -> vector<4x32xf32>
    %c0_5 = arith.constant 0 : index
    %c0_6 = arith.constant 0 : index
    %4 = vector.load %arg4[%c0_5, %c0_6] : memref<1x32xf32, #tpu.memory_space<vmem>>, vector<1x32xf32>
    %5 = vector.broadcast %4 : vector<1x32xf32> to vector<4x32xf32>
    %6 = arith.addf %3, %5 : vector<4x32xf32>
    %7 = math.tanh %6 : vector<4x32xf32>
    %c0_7 = arith.constant 0 : index
    %c0_8 = arith.constant 0 : index
    %8 = vector.load %arg5[%c0_7, %c0_8] : memref<32x32xf32, #tpu.memory_space<vmem>>, vector<32x32xf32>
    %cst_9 = arith.constant dense<0.000000e+00> : vector<4x32xf32>
    %9 = tpu.matmul %7, %8, %cst_9 {dimension_numbers = #tpu.dot_dimension_numbers<[1], [0], [0], [1], [0, 0, 1, 1], [], []>} : vector<4x32xf32>, vector<32x32xf32>, vector<4x32xf32> -> vector<4x32xf32>
    %c0_10 = arith.constant 0 : index
    %c0_11 = arith.constant 0 : index
    %10 = vector.load %arg6[%c0_10, %c0_11] : memref<1x32xf32, #tpu.memory_space<vmem>>, vector<1x32xf32>
    %11 = vector.broadcast %10 : vector<1x32xf32> to vector<4x32xf32>
    %12 = arith.addf %9, %11 : vector<4x32xf32>
    %13 = math.tanh %12 : vector<4x32xf32>
    %c0_12 = arith.constant 0 : index
    %c0_13 = arith.constant 0 : index
    %14 = vector.load %arg7[%c0_12, %c0_13] : memref<32x1xf32, #tpu.memory_space<vmem>>, vector<32x1xf32>
    %cst_14 = arith.constant dense<0.000000e+00> : vector<4x1xf32>
    %15 = tpu.matmul %13, %14, %cst_14 {dimension_numbers = #tpu.dot_dimension_numbers<[1], [0], [0], [1], [0, 0, 1, 1], [], []>} : vector<4x32xf32>, vector<32x1xf32>, vector<4x1xf32> -> vector<4x1xf32>
    %c0_15 = arith.constant 0 : index
    %c0_16 = arith.constant 0 : index
    %16 = vector.load %arg8[%c0_15, %c0_16] : memref<136x32xf32, #tpu.memory_space<vmem>>, vector<136x32xf32>
    %cst_17 = arith.constant dense<0.000000e+00> : vector<4x32xf32>
    %17 = tpu.matmul %1, %16, %cst_17 {dimension_numbers = #tpu.dot_dimension_numbers<[1], [0], [0], [1], [0, 0, 1, 1], [], []>} : vector<4x136xf32>, vector<136x32xf32>, vector<4x32xf32> -> vector<4x32xf32>
    %c0_18 = arith.constant 0 : index
    %c0_19 = arith.constant 0 : index
    %18 = vector.load %arg9[%c0_18, %c0_19] : memref<1x32xf32, #tpu.memory_space<vmem>>, vector<1x32xf32>
    %19 = vector.broadcast %18 : vector<1x32xf32> to vector<4x32xf32>
    %20 = arith.addf %17, %19 : vector<4x32xf32>
    %21 = math.tanh %20 : vector<4x32xf32>
    %c0_20 = arith.constant 0 : index
    %c0_21 = arith.constant 0 : index
    %22 = vector.load %arg10[%c0_20, %c0_21] : memref<32x32xf32, #tpu.memory_space<vmem>>, vector<32x32xf32>
    %cst_22 = arith.constant dense<0.000000e+00> : vector<4x32xf32>
    %23 = tpu.matmul %21, %22, %cst_22 {dimension_numbers = #tpu.dot_dimension_numbers<[1], [0], [0], [1], [0, 0, 1, 1], [], []>} : vector<4x32xf32>, vector<32x32xf32>, vector<4x32xf32> -> vector<4x32xf32>
    %c0_23 = arith.constant 0 : index
    %c0_24 = arith.constant 0 : index
    %24 = vector.load %arg11[%c0_23, %c0_24] : memref<1x32xf32, #tpu.memory_space<vmem>>, vector<1x32xf32>
    %25 = vector.broadcast %24 : vector<1x32xf32> to vector<4x32xf32>
    %26 = arith.addf %23, %25 : vector<4x32xf32>
    %27 = math.tanh %26 : vector<4x32xf32>
    %c0_25 = arith.constant 0 : index
    %c0_26 = arith.constant 0 : index
    %28 = vector.load %arg12[%c0_25, %c0_26] : memref<32x1xf32, #tpu.memory_space<vmem>>, vector<32x1xf32>
    %cst_27 = arith.constant dense<0.000000e+00> : vector<4x1xf32>
    %29 = tpu.matmul %27, %28, %cst_27 {dimension_numbers = #tpu.dot_dimension_numbers<[1], [0], [0], [1], [0, 0, 1, 1], [], []>} : vector<4x32xf32>, vector<32x1xf32>, vector<4x1xf32> -> vector<4x1xf32>
    %30 = arith.addf %15, %29 : vector<4x1xf32>
    %c0_28 = arith.constant 0 : index
    %31 = memref.load %arg13[%c0_28] : memref<1xf32, #tpu.memory_space<smem>>
    %32 = vector.broadcast %31 : f32 to vector<4x1xf32>
    %33 = arith.addf %30, %32 : vector<4x1xf32>
    %c0_29 = arith.constant 0 : index
    %c0_30 = arith.constant 0 : index
    %34 = vector.load %arg14[%c0_29, %c0_30] : memref<4x1xf32, #tpu.memory_space<vmem>>, vector<4x1xf32>
    tpu.vector_store %arg14[%c0_29, %c0_30], %33 {strides = array<i32>} : memref<4x1xf32, #tpu.memory_space<vmem>>, vector<4x1xf32>,
    return
  }
  func.func @transform_0(%arg0: i32) -> (i32, i32) {
    %c0_i32 = arith.constant 0 : i32
    %c0_i32_0 = arith.constant 0 : i32
    return %arg0, %c0_i32 : i32, i32
  }
  func.func @transform_1(%arg0: i32) -> (i32, i32) {
    %c0_i32 = arith.constant 0 : i32
    %c0_i32_0 = arith.constant 0 : i32
    return %arg0, %c0_i32 : i32, i32
  }
  func.func @transform_2(%arg0: i32) -> (i32, i32) {
    %c0_i32 = arith.constant 0 : i32
    %c0_i32_0 = arith.constant 0 : i32
    %c0_i32_1 = arith.constant 0 : i32
    return %c0_i32, %c0_i32_0 : i32, i32
  }
  func.func @transform_3(%arg0: i32) -> (i32, i32) {
    %c0_i32 = arith.constant 0 : i32
    %c0_i32_0 = arith.constant 0 : i32
    %c0_i32_1 = arith.constant 0 : i32
    return %c0_i32, %c0_i32_0 : i32, i32
  }
  func.func @transform_4(%arg0: i32) -> (i32, i32) {
    %c0_i32 = arith.constant 0 : i32
    %c0_i32_0 = arith.constant 0 : i32
    %c0_i32_1 = arith.constant 0 : i32
    return %c0_i32, %c0_i32_0 : i32, i32
  }
  func.func @transform_5(%arg0: i32) -> (i32, i32) {
    %c0_i32 = arith.constant 0 : i32
    %c0_i32_0 = arith.constant 0 : i32
    %c0_i32_1 = arith.constant 0 : i32
    return %c0_i32, %c0_i32_0 : i32, i32
  }
  func.func @transform_6(%arg0: i32) -> (i32, i32) {
    %c0_i32 = arith.constant 0 : i32
    %c0_i32_0 = arith.constant 0 : i32
    %c0_i32_1 = arith.constant 0 : i32
    return %c0_i32, %c0_i32_0 : i32, i32
  }
  func.func @transform_7(%arg0: i32) -> (i32, i32) {
    %c0_i32 = arith.constant 0 : i32
    %c0_i32_0 = arith.constant 0 : i32
    %c0_i32_1 = arith.constant 0 : i32
    return %c0_i32, %c0_i32_0 : i32, i32
  }
  func.func @transform_8(%arg0: i32) -> (i32, i32) {
    %c0_i32 = arith.constant 0 : i32
    %c0_i32_0 = arith.constant 0 : i32
    %c0_i32_1 = arith.constant 0 : i32
    return %c0_i32, %c0_i32_0 : i32, i32
  }
  func.func @transform_9(%arg0: i32) -> (i32, i32) {
    %c0_i32 = arith.constant 0 : i32
    %c0_i32_0 = arith.constant 0 : i32
    %c0_i32_1 = arith.constant 0 : i32
    return %c0_i32, %c0_i32_0 : i32, i32
  }
  func.func @transform_10(%arg0: i32) -> (i32, i32) {
    %c0_i32 = arith.constant 0 : i32
    %c0_i32_0 = arith.constant 0 : i32
    %c0_i32_1 = arith.constant 0 : i32
    return %c0_i32, %c0_i32_0 : i32, i32
  }
  func.func @transform_11(%arg0: i32) -> (i32, i32) {
    %c0_i32 = arith.constant 0 : i32
    %c0_i32_0 = arith.constant 0 : i32
    %c0_i32_1 = arith.constant 0 : i32
    return %c0_i32, %c0_i32_0 : i32, i32
  }
  func.func @transform_12(%arg0: i32) -> i32 {
    %c0_i32 = arith.constant 0 : i32
    %c0_i32_0 = arith.constant 0 : i32
    return %c0_i32 : i32
  }
  func.func @transform_13(%arg0: i32) -> (i32, i32) {
    %c0_i32 = arith.constant 0 : i32
    %c0_i32_0 = arith.constant 0 : i32
    return %arg0, %c0_i32 : i32, i32
  }
}

</mosaic_0001>

<bundles_post_ra>
// kernel: discriminator_forward.1
= control target key start
LH: loop header
LB: loop body
LE: loop exit
PB: predicated region body
PF: predicated region fallthrough
CT: control target
= control target key end

     0   :  { %v722_v0 = vmov 0.0|0.0   ;;  %vm723_vm0 = vmmov 0   ;;  %v724_v6 = vmov 0.0   ;;  %vm248_vm1 = vcmask 64512   ;;  %s964_s7 = inlined_call_operand.vmem [shape: f32[136,32], index: 7, kind: input, shape index: {}]   ;;  %s965_s2 = inlined_call_operand.vmem [shape: f32[32,32], index: 2, kind: input, shape index: {}]   ;;  %s966_s1 = inlined_call_operand.vmem [shape: f32[4,136], index: 1, kind: input, shape index: {}]   ;;  %s967_s0 = inlined_call_operand.vmem [shape: f32[4,32], index: 0, kind: input, shape index: {}]   ;;  %s968_s4 = inlined_call_operand.vmem [shape: f32[32,32], index: 4, kind: input, shape index: {}]   ;;  %s969_s3 = inlined_call_operand.vmem [shape: f32[1,32], index: 3, kind: input, shape index: {}]   ;;  %s970_s9 = inlined_call_operand.vmem [shape: f32[32,32], index: 9, kind: input, shape index: {}]   ;;  %s971_s8 = inlined_call_operand.vmem [shape: f32[1,32], index: 8, kind: input, shape index: {}]   ;;  %s972_s11 = inlined_call_operand.vmem [shape: f32[32,1], index: 11, kind: input, shape index: {}]   ;;  %s973_s10 = inlined_call_operand.vmem [shape: f32[1,32], index: 10, kind: input, shape index: {}]   ;;  %s974_s5 = inlined_call_operand.vmem [shape: f32[1,32], index: 5, kind: input, shape index: {}]   ;;  %s975_s6 = inlined_call_operand.vmem [shape: f32[32,1], index: 6, kind: input, shape index: {}]   ;;  %s976_s12 = inlined_call_operand.<no memory space> [shape: f32[1], index: 12, kind: input, shape index: {}]   ;;  %s977_s13 = inlined_call_operand.vmem [shape: f32[4,1], index: 13, kind: output, shape index: {}]  }
   0x1   :  { %668 = vmatprep.subr.bf16.mxu0 %v722_v0  ;;  %v222_v1 = vld [vmem:[%s964_s7] sm:$0xff]  ;;  %v223_v2 = vld [vmem:[%s964_s7 + $0x8] sm:$0xff]  ;;  %v224_v3 = vld [vmem:[%s964_s7 + $0x10] sm:$0xff]  ;;  %656 = vmatprep.subr.bf16.mxu1 %v722_v0  ;;  %vm58_vm2 = vcmask 261120   ;;  %vm560_vm3 = vcmask 3072  }
   0x2   :  { %v669_v4 = vpack.c.bf16 %v223_v2, %v222_v1  ;;  %v225_v5 = vld [vmem:[%s964_s7 + $0x18] sm:$0xff]  ;;  %609 = vmatprep.mubr.msk.f32.mxu1 %vm723_vm0, %v724_v6  ;;  %v47_v8 = vld [vmem:[%s965_s2] sm:$0xff]  ;;  %v48_v9 = vld [vmem:[%s965_s2 + $0x8] sm:$0xff] }
   0x3   :  { %v672_v7 = vpack.c.bf16 %v225_v5, %v224_v3  ;;  %v226_v10 = vld [vmem:[%s964_s7 + $0x20] sm:$0xff]  ;;  %v227_v11 = vld [vmem:[%s964_s7 + $0x28] sm:$0xff]  ;;  %v657_v12 = vpack.c.bf16 %v48_v9, %v47_v8  ;;  %v49_v13 = vld [vmem:[%s965_s2 + $0x10] sm:$0xff] }
   0x4   :  { %670 = vmatpush1.bf16.msra.mxu0 %v669_v4  ;;  %v50_v14 = vld [vmem:[%s965_s2 + $0x18] sm:$0xff]  ;;  %v675_v16 = vpack.c.bf16 %v227_v11, %v226_v10  ;;  %v46_v17 = vld [vmem:[%s966_s1] sm:$0xff]  ;;  %v228_v18 = vld [vmem:[%s964_s7 + $0x30] sm:$0xff] }
   0x5   :  { %671 = vmatprep.subr.bf16.mxu0 %v722_v0  ;;  %658 = vmatpush3.bf16.msra.mxu1 %v657_v12  ;;  %v660_v15 = vpack.c.bf16 %v50_v14, %v49_v13  ;;  %v229_v19 = vld [vmem:[%s964_s7 + $0x38] sm:$0xff]  ;;  %v247_v20 = vcombine.high %v46_v17, %v46_v17  ;;  %v45_v21 = vld [vmem:[%s967_s0] sm:$0xf]  ;;  %v231_v24 = vld [vmem:[%s964_s7 + $0x48] sm:$0xff] }
   0x6   :  { %659 = vmatprep.subr.bf16.mxu1 %v722_v0  ;;  %v678_v22 = vpack.c.bf16 %v229_v19, %v228_v18  ;;  %v230_v23 = vld [vmem:[%s964_s7 + $0x40] sm:$0xff]  ;;  %v232_v26 = vld [vmem:[%s964_s7 + $0x50] sm:$0xff]  ;;  %v233_v27 = vld [vmem:[%s964_s7 + $0x58] sm:$0xff] }
   0x7   :  { %571 = vmatprep.mubr.msk.f32.mxu0 %vm248_vm1, %v247_v20  ;;  %v681_v25 = vpack.c.bf16 %v231_v24, %v230_v23  ;;  %v684_v28 = vpack.c.bf16 %v233_v27, %v232_v26  ;;  %v234_v29 = vld [vmem:[%s964_s7 + $0x60] sm:$0xff]  ;;  %v235_v30 = vld [vmem:[%s964_s7 + $0x68] sm:$0xff]  ;;  %v236_v32 = vld [vmem:[%s964_s7 + $0x70] sm:$0xff] }
   0x8   :  { %673 = vmatpush1.bf16.msra.mxu0 %v672_v7  ;;  %v687_v31 = vpack.c.bf16 %v235_v30, %v234_v29  ;;  %v237_v33 = vld [vmem:[%s964_s7 + $0x78] sm:$0xff]  ;;  %v238_v35 = vld [vmem:[%s964_s7 + $0x80] sm:$0xff]  ;;  %v134_v37 = vld [vmem:[%s968_s4 + $0x8] sm:$0xff] }
   0x9   :  { %674 = vmatprep.subr.bf16.mxu0 %v722_v0  ;;  %661 = vmatpush3.bf16.msra.mxu1 %v660_v15  ;;  %v690_v34 = vpack.c.bf16 %v237_v33, %v236_v32  ;;  %v133_v36 = vld [vmem:[%s968_s4] sm:$0xff]  ;;  %v135_v39 = vld [vmem:[%s968_s4 + $0x10] sm:$0xff]  ;;  %v136_v40 = vld [vmem:[%s968_s4 + $0x18] sm:$0xff] }
   0xa   :  { %662 = vmatprep.subr.bf16.mxu1 %v722_v0  ;;  %v663_v38 = vpack.c.bf16 %v134_v37, %v133_v36  ;;  %v666_v41 = vpack.c.bf16 %v136_v40, %v135_v39  ;;  %v566_v42 = vld [vmem:[%s969_s3] ss:$0 sm:$0xff]  ;;  %v323_v47 = vld [vmem:[%s970_s9 + $0x8] sm:$0xff]  ;;  %v324_v49 = vld [vmem:[%s970_s9 + $0x10] sm:$0xff] }
   0xb   :  { %v322_v46 = vld [vmem:[%s970_s9] sm:$0xff]  ;;  %v325_v50 = vld [vmem:[%s970_s9 + $0x18] sm:$0xff]  ;;  %v408_v59 = vld [vmem:[%s972_s11 + $0x8] sm:$0xff] }
   0xc   :  { %676 = vmatpush1.bf16.msra.mxu0 %v675_v16  ;;  %610 = vmatmul.mubr.msk.f32.vlgmr.msra.gmra.mrb[0].mxu1 %vm58_vm2, %v45_v21  ;;  %v693_v48 = vpack.c.bf16 %v323_v47, %v322_v46  ;;  %v696_v52 = vpack.c.bf16 %v325_v50, %v324_v49  ;;  %v570_v53 = vld [vmem:[%s971_s8] ss:$0 sm:$0xff]  ;;  %v409_v60 = vld [vmem:[%s972_s11 + $0x10] sm:$0xff]  ;;  %v410_v62 = vld [vmem:[%s972_s11 + $0x18] sm:$0xff]  ;;  %v558_v21 = vstv %s976_s12 }
   0xd   :  { %677 = vmatprep.subr.bf16.mxu0 %v722_v0  ;;  %620 = vmatprep.mubr.msk.f32.mxu1 %vm723_vm0, %v724_v6  ;;  %v407_v58 = vld [vmem:[%s972_s11] sm:$0xff]  ;;  %v702_v63 = vpack.c.bf16 %v410_v62, %v409_v60  ;;  %v219_v11 = vld [vmem:[%s975_s6 + $0x8] sm:$0xff]  ;;  %v220_v13 = vld [vmem:[%s975_s6 + $0x10] sm:$0xff] }
   0xe   :  { %664 = vmatpush3.bf16.msra.mxu1 %v663_v38  ;;  %v699_v61 = vpack.c.bf16 %v408_v59, %v407_v58  ;;  %v572_v3 = vld [vmem:[%s973_s10] ss:$0 sm:$0xff]  ;;  %v221_v14 = vld [vmem:[%s975_s6 + $0x18] sm:$0xff] }
   0xf   :  { %665 = vmatprep.subr.bf16.mxu1 %v722_v0  ;;  %v568_v8 = vld [vmem:[%s974_s5] ss:$0 sm:$0xff]  ;;  %v708_v16 = vpack.c.bf16 %v221_v14, %v220_v13 }
  0x10   :  { %679 = vmatpush1.bf16.msra.mxu0 %v678_v22  ;;  %v218_v10 = vld [vmem:[%s975_s6] sm:$0xff] }
  0x11   :  { %680 = vmatprep.subr.bf16.mxu0 %v722_v0  ;;  %v705_v12 = vpack.c.bf16 %v219_v11, %v218_v10 }
  0x12   :  { %667 = vmatpush3.bf16.msra.mxu1 %v666_v41 }
  0x13   :  { %692 = vmatprep.subr.bf16.mxu1 %v722_v0 }
  0x14   :  { %682 = vmatpush1.bf16.msra.mxu0 %v681_v25 }
  0x15   :  { %683 = vmatprep.subr.bf16.mxu0 %v722_v0 }
  0x18   :  { %685 = vmatpush1.bf16.msra.mxu0 %v684_v28 }
  0x19   :  { %686 = vmatprep.subr.bf16.mxu0 %v722_v0 }
  0x1c   :  { %688 = vmatpush1.bf16.msra.mxu0 %v687_v31 }
  0x1d   :  { %689 = vmatprep.subr.bf16.mxu0 %v722_v0 }
  0x20   :  { %691 = vmatpush1.bf16.msra.mxu0 %v690_v34 }
  0x21   :  { %283 = vmatprep.subr.mxu0 %v724_v6 }
  0x24   :  { %284 = vmatpush1.msra.mxu0 %v238_v35 }
  0x25   :  { %316 = vmatmul.mubr.f32.vlgmr.msra.gmra.mrb[0].mxu0 %v46_v17 }
  0xdf   :  { %v128_v43 = vpop.f32.mrb[0].mxu1 }
  0xe0   :  { %v129_v44 = vadd.f32 %v566_v42, %v128_v43  ;;  %v611_v45 = vpop.f32.mrb[1].mxu1 }
  0xe2   :  { %714 = vtanh.f32 %v129_v44 }
  0xec   :  { %v715_v51 = vpop.eup %714 }
  0xed   :  { %621 = vmatmul.mubr.msk.f32.vlgmr.msra.gmra.mrb[2].mxu1 %vm58_vm2, %v715_v51 }
  0xee   :  { %694 = vmatpush3.bf16.msra.mxu1 %v693_v48  ;;  %631 = vmatprep.mubr.msk.f32.mxu1 %vm723_vm0, %v724_v6 }
  0xef   :  { %695 = vmatprep.subr.bf16.mxu1 %v722_v0 }
  0xf2   :  { %697 = vmatpush3.bf16.msra.mxu1 %v696_v52 }
  0xf3   :  { %698 = vmatprep.subr.bf16.mxu1 %v722_v0 }
  0xf8   :  { %v317_v54 = vpop.f32.mrb[0].mxu0 }
  0xf9   :  { %v318_v55 = vadd.f32 %v570_v53, %v317_v54  ;;  %v319_v56 = vpop.f32.mrb[1].mxu0 }
  0xfb   :  { %716 = vtanh.f32 %v318_v55 }
 0x105   :  { %v717_v57 = vpop.eup %716 }
 0x106   :  { %632 = vmatmul.mubr.msk.f32.vlgmr.msra.gmra.mrb[4].mxu1 %vm58_vm2, %v717_v57 }
 0x107   :  { %642 = vmatprep.mubr.msk.f32.mxu1 %vm723_vm0, %v724_v6  ;;  %700 = vmatpush3.bf16.msra.mxu1 %v699_v61 }
 0x108   :  { %701 = vmatprep.subr.bf16.mxu1 %v722_v0 }
 0x10b   :  { %703 = vmatpush3.bf16.msra.mxu1 %v702_v63 }
 0x10c   :  { %704 = vmatprep.subr.bf16.mxu1 %v722_v0 }
 0x1c0   :  { %v213_v1 = vpop.f32.mrb[2].mxu1 }
 0x1c1   :  { %v622_v2 = vpop.f32.mrb[3].mxu1  ;;  %v214_v9 = vadd.f32 %v568_v8, %v213_v1 }
 0x1d9   :  { %v402_v4 = vpop.f32.mrb[4].mxu1 }
 0x1da   :  { %v403_v5 = vadd.f32 %v572_v3, %v402_v4  ;;  %v633_v7 = vpop.f32.mrb[5].mxu1 }
 0x1dc   :  { %718 = vtanh.f32 %v403_v5 }
 0x1dd   :  { %720 = vtanh.f32 %v214_v9 }
 0x1e6   :  { %v719_v15 = vpop.eup %718 }
 0x1e7   :  { %643 = vmatmul.mubr.msk.f32.vlgmr.msra.gmra.mrb[6].mxu1 %vm58_vm2, %v719_v15  ;;  %v721_v17 = vpop.eup %720 }
 0x1e8   :  { %706 = vmatpush3.bf16.msra.mxu1 %v705_v12  ;;  %653 = vmatprep.mubr.msk.f32.mxu1 %vm723_vm0, %v724_v6 }
 0x1e9   :  { %707 = vmatprep.subr.bf16.mxu1 %v722_v0 }
 0x1ec   :  { %709 = vmatpush3.bf16.msra.mxu1 %v708_v16 }
 0x1ef   :  { %654 = vmatmul.mubr.msk.f32.vlgmr.msra.gmra.mrb[8].mxu1 %vm58_vm2, %v721_v17 }
 0x2ba   :  { %v480_v18 = vpop.f32.mrb[6].mxu1 }
 0x2bb   :  { %v644_v19 = vpop.f32.mrb[7].mxu1 }
 0x2c2   :  { %v553_v20 = vpop.f32.mrb[8].mxu1 }
 0x2c3   :  { %v554_v22 = vadd.f32 %v553_v20, %v480_v18  ;;  %v655_v23 = vpop.f32.mrb[9].mxu1 }
 0x2c5   :  { %v559_v24 = vadd.f32 %v558_v21, %v554_v22 }
 0x2c7   :  { %561 = vst.msk [vmem:[%s977_s13] sm:$0xf] %vm560_vm3, %v559_v24 }

</bundles_post_ra>
